<compile_context>
chip_gen: v6e
topology: v6e:2x2x1
jax: 0.10.0
libtpu: 0.0.40
codegen_flags: <defaults>
</compile_context>

<pallas_src>
import functools

import jax
import jax.numpy as jnp
import numpy as np
from jax import lax
from jax.experimental import pallas as pl
from jax.experimental.pallas import tpu as pltpu


# ----------------------------------------------------------------------------
# Pallas kernel: fused bidirectional LSTM recurrence over one sequence chunk.
# ----------------------------------------------------------------------------
def _bidir_lstm_layer_kernel(xw_ref, whh_ref, h0_ref, c0_ref,
                             y_ref, hn_ref, cn_ref, h_sc, c_sc):
    """One grid step = one chunk of T recurrence steps for BOTH directions.

    xw_ref  : (T, 2B, 4H) precomputed x@W_ih^T + (b_ih+b_hh).
              Rows [0:B]   = forward direction, time order.
              Rows [B:2B]  = backward direction, time-REVERSED (= step) order.
    whh_ref : (H, 8H)  [W_hh_f^T | W_hh_b^T] stacked along lanes (resident).
    h0_ref  : (2B, H)  [h0_f ; h0_b]
    c0_ref  : (2B, H)  [c0_f ; c0_b]
    y_ref   : (T, 2B, H) packed outputs, step order (bwd half time-reversed).
    hn_ref  : (2B, H)  final hidden state (written only on the last chunk).
    cn_ref  : (2B, H)  final cell state   (written only on the last chunk).
    h_sc    : (2B, H)  hidden state carried across chunks.
    c_sc    : (2B, H)  cell state carried across chunks.
    """
    T = xw_ref.shape[0]
    B2, H = h0_ref.shape
    B = B2 // 2
    G = 4 * H

    @pl.when(pl.program_id(0) == 0)
    def _init():
        h_sc[...] = h0_ref[...]
        c_sc[...] = c0_ref[...]

    # Hoisted constants (resident across the whole recurrence).
    whh = whh_ref[...]                                          # (H, 8H)
    # Forward rows (< B) take the first 4H result columns (W_hh_f),
    # backward rows take the last 4H (W_hh_b).
    rowmask = lax.broadcasted_iota(jnp.int32, (B2, G), 0) < B

    def step(t, carry):
        h, c = carry                                            # (2B,H) values
        rec = jnp.dot(h, whh, preferred_element_type=jnp.float32,
                      precision=lax.Precision.HIGHEST)          # (2B, 8H)
        g = xw_ref[t] + jnp.where(rowmask, rec[:, :G], rec[:, G:])  # (2B, 4H)

        # PyTorch gate order: i, f, g, o.  One sigmoid pass over the full gate
        # tensor; slices come out of the same vreg pass.
        sig = jax.nn.sigmoid(g)
        i = sig[:, 0:H]
        f = sig[:, H:2 * H]
        o = sig[:, 3 * H:4 * H]
        gg = jnp.tanh(g[:, 2 * H:3 * H])

        c_new = f * c + i * gg                                  # (2B, H)
        h_new = o * jnp.tanh(c_new)                             # (2B, H)

        y_ref[t] = h_new.astype(y_ref.dtype)                    # single packed store
        return h_new, c_new

    unroll = True if T <= 16 else 8
    h_fin, c_fin = lax.fori_loop(0, T, step, (h_sc[...], c_sc[...]),
                                 unroll=unroll)

    # Carry state to the next chunk (once per chunk, not per step).
    h_sc[...] = h_fin
    c_sc[...] = c_fin

    @pl.when(pl.program_id(0) == pl.num_programs(0) - 1)
    def _finalize():
        hn_ref[...] = h_fin
        cn_ref[...] = c_fin


def _pick_chunk_len(seq, cap, bytes_per_step, vmem_budget=48 << 20):
    """Largest divisor of seq that is <= cap and fits the VMEM budget.

    Guards against the T=1 cliff for awkward/prime sequence lengths by falling
    back to a single chunk when the whole sequence fits the budget.
    """
    cap = int(min(seq, max(1, cap)))
    max_t_budget = max(1, vmem_budget // max(1, bytes_per_step))
    cap = min(cap, max_t_budget)
    t = cap
    while seq % t != 0:
        t -= 1
    if t < max(2, cap // 8) and seq <= max_t_budget:
        t = seq
    return t


def bidirectional_lstm_layer_pallas(xw, whh_cat, h0_cat, c0_cat,
                                    *, chunk_len=1024):
    """One bidirectional LSTM layer (both directions fused in one pallas_call).

    xw      : (seq, 2B, 4H)  merged input projection (+ fused bias);
              rows [0:B] fwd in time order, rows [B:2B] bwd in reversed order.
    whh_cat : (H, 8H)        [W_hh_f^T | W_hh_b^T]
    h0_cat  : (2B, H), c0_cat: (2B, H)
    Returns (y_packed (seq, 2B, H), hn (2B, H), cn (2B, H)).
    """
    seq, B2, G = xw.shape
    H = G // 4
    # Double-buffered per-timestep working set: xw in + y out.
    bytes_per_step = 2 * (B2 * G * 4) + 2 * (B2 * H * 4)
    T = _pick_chunk_len(seq, chunk_len, bytes_per_step)
    nc = seq // T

    grid_spec = pltpu.PrefetchScalarGridSpec(
        num_scalar_prefetch=0,
        grid=(nc,),
        in_specs=[
            pl.BlockSpec((T, B2, G), lambda k: (k, 0, 0)),      # merged xw chunk
            pl.BlockSpec((H, 2 * G), lambda k: (0, 0)),         # W_hh (resident)
            pl.BlockSpec((B2, H), lambda k: (0, 0)),            # h0
            pl.BlockSpec((B2, H), lambda k: (0, 0)),            # c0
        ],
        out_specs=(
            pl.BlockSpec((T, B2, H), lambda k: (k, 0, 0)),      # y (packed)
            pl.BlockSpec((B2, H), lambda k: (0, 0)),            # hn (resident)
            pl.BlockSpec((B2, H), lambda k: (0, 0)),            # cn (resident)
        ),
        scratch_shapes=[
            pltpu.VMEM((B2, H), jnp.float32),                   # h carried
            pltpu.VMEM((B2, H), jnp.float32),                   # c carried
        ],
    )
    out_shape = (
        jax.ShapeDtypeStruct((seq, B2, H), jnp.float32),
        jax.ShapeDtypeStruct((B2, H), jnp.float32),
        jax.ShapeDtypeStruct((B2, H), jnp.float32),
    )
    # Explicit VMEM budget: keep it v7x-safe (64 MiB physical) while giving
    # headroom over the per-chunk working-set estimate.
    vmem_limit = int(min(max(T * bytes_per_step + (4 << 20), 32 << 20), 56 << 20))
    return pl.pallas_call(
        _bidir_lstm_layer_kernel,
        out_shape=out_shape,
        grid_spec=grid_spec,
        compiler_params=pltpu.CompilerParams(
            dimension_semantics=("arbitrary",),
            vmem_limit_bytes=vmem_limit),
    )(xw, whh_cat, h0_cat, c0_cat)


# ----------------------------------------------------------------------------
# Multi-layer bidirectional LSTM forward (torch.nn.LSTM semantics).
# ----------------------------------------------------------------------------
def bidirectional_lstm_forward_pallas(x, params, h0, c0, *, chunk_len=1024):
    """x: (seq, batch, in_dim); params[l][d] = (w_ih, w_hh, b_ih, b_hh);
    h0, c0: (2*num_layers, batch, hidden). Returns (out, hn, cn)."""
    seq, B, _ = x.shape
    H = h0.shape[-1]
    hp = lax.Precision.HIGHEST
    yf = yb = None
    hn_list, cn_list = [], []
    for l, ((wih_f, whh_f, bih_f, bhh_f),
            (wih_b, whh_b, bih_b, bhh_b)) in enumerate(params):
        # Hoisted whole-sequence input projection with fused bias (plain XLA).
        if l == 0:
            xwf = jnp.einsum('sbi,gi->sbg', x, wih_f, precision=hp) + (bih_f + bhh_f)
            xwb = jnp.einsum('sbi,gi->sbg', x, wih_b, precision=hp) + (bih_b + bhh_b)
        else:
            # Avoid materializing concat([yf, yb], -1): split W_ih columns.
            xwf = (jnp.einsum('sbh,gh->sbg', yf, wih_f[:, :H], precision=hp)
                   + jnp.einsum('sbh,gh->sbg', yb, wih_f[:, H:], precision=hp)
                   + (bih_f + bhh_f))
            xwb = (jnp.einsum('sbh,gh->sbg', yf, wih_b[:, :H], precision=hp)
                   + jnp.einsum('sbh,gh->sbg', yb, wih_b[:, H:], precision=hp)
                   + (bih_b + bhh_b))
        # Merged (seq, 2B, 4H): fwd rows time order, bwd rows reversed order.
        xw = jnp.concatenate([xwf, xwb[::-1]], axis=1)
        # Recurrent weights stacked along lanes: (H, 8H).
        whh_cat = jnp.concatenate([whh_f.T, whh_b.T], axis=1)
        h0_cat = jnp.concatenate([h0[2 * l], h0[2 * l + 1]], axis=0)
        c0_cat = jnp.concatenate([c0[2 * l], c0[2 * l + 1]], axis=0)

        y, hn_l, cn_l = bidirectional_lstm_layer_pallas(
            xw, whh_cat, h0_cat, c0_cat, chunk_len=chunk_len)

        yf = y[:, :B, :]            # forward outputs, already in time order
        yb = y[::-1, B:, :]         # backward outputs, back to time order
        hn_list.append(hn_l.reshape(2, B, H))
        cn_list.append(cn_l.reshape(2, B, H))

    out = jnp.concatenate([yf, yb], axis=-1)     # only final concat materialized
    hn = jnp.concatenate(hn_list, axis=0)
    cn = jnp.concatenate(cn_list, axis=0)
    return out, hn, cn


# ----------------------------------------------------------------------------
# Pure-JAX reference (same math) for correctness checking.
# ----------------------------------------------------------------------------
def _lstm_dir_ref(x, w_ih, w_hh, b_ih, b_hh, h0, c0):
    H = h0.shape[-1]
    bias = b_ih + b_hh
    hp = lax.Precision.HIGHEST

    def cell(carry, x_t):
        h, c = carry
        g = (jnp.dot(x_t, w_ih.T, precision=hp)
             + jnp.dot(h, w_hh.T, precision=hp) + bias)
        i = jax.nn.sigmoid(g[:, 0:H])
        f = jax.nn.sigmoid(g[:, H:2 * H])
        gg = jnp.tanh(g[:, 2 * H:3 * H])
        o = jax.nn.sigmoid(g[:, 3 * H:4 * H])
        c = f * c + i * gg
        h = o * jnp.tanh(c)
        return (h, c), h

    (hn, cn), ys = lax.scan(cell, (h0, c0), x)
    return ys, hn, cn


def bidirectional_lstm_forward_ref(x, params, h0, c0):
    layer_in = x
    hn_list, cn_list = [], []
    for l, layer_p in enumerate(params):
        outs = []
        for d in range(2):
            w_ih, w_hh, b_ih, b_hh = layer_p[d]
            xin = layer_in if d == 0 else layer_in[::-1]
            ys, hn, cn = _lstm_dir_ref(xin, w_ih, w_hh, b_ih, b_hh,
                                       h0[2 * l + d], c0[2 * l + d])
            if d == 1:
                ys = ys[::-1]
            outs.append(ys)
            hn_list.append(hn)
            cn_list.append(cn)
        layer_in = jnp.concatenate(outs, axis=-1)
    return layer_in, jnp.stack(hn_list), jnp.stack(cn_list)


# ----------------------------------------------------------------------------
# Parameter init mirroring nn.LSTM shapes (uniform(-1/sqrt(H), 1/sqrt(H))).
# ----------------------------------------------------------------------------
def init_params(key, layer_sizes, vector_dim):
    hidden = layer_sizes[0]
    num_layers = len(layer_sizes)
    k = 1.0 / np.sqrt(hidden)
    keys = jax.random.split(key, num_layers * 2 * 4)
    ki = 0
    params = []
    for l in range(num_layers):
        in_dim = vector_dim if l == 0 else 2 * hidden
        layer_p = []
        for _d in range(2):
            w_ih = jax.random.uniform(keys[ki], (4 * hidden, in_dim),
                                      jnp.float32, -k, k); ki += 1
            w_hh = jax.random.uniform(keys[ki], (4 * hidden, hidden),
                                      jnp.float32, -k, k); ki += 1
            b_ih = jax.random.uniform(keys[ki], (4 * hidden,),
                                      jnp.float32, -k, k); ki += 1
            b_hh = jax.random.uniform(keys[ki], (4 * hidden,),
                                      jnp.float32, -k, k); ki += 1
            layer_p.append((w_ih, w_hh, b_ih, b_hh))
        params.append(layer_p)
    return params


if __name__ == "__main__":
    # Shapes consistent with BidirectionalLSTM: (sequence_length, batch, vector_dim).
    seq_len = 8
    batch_size = 2
    vector_dim = 64
    layer_sizes = [32, 32]          # 2-layer bidirectional LSTM, hidden=32
    hidden = layer_sizes[0]
    num_layers = len(layer_sizes)

    root = jax.random.PRNGKey(0)
    k_param, k_x, k_h0, k_c0 = jax.random.split(root, 4)

    params = init_params(k_param, layer_sizes, vector_dim)
    x = jax.random.normal(k_x, (seq_len, batch_size, vector_dim), jnp.float32)
    # The PyTorch module draws h0/c0 from torch.rand each forward call; here
    # they are deterministic uniform(0, 1) draws.
    h0 = jax.random.uniform(k_h0, (num_layers * 2, batch_size, hidden), jnp.float32)
    c0 = jax.random.uniform(k_c0, (num_layers * 2, batch_size, hidden), jnp.float32)

    # chunk_len=4 forces 2 sequence chunks so the gridded, state-carrying path
    # (scratch carry, pl.when init/finalize) is exercised.
    fwd = jax.jit(functools.partial(bidirectional_lstm_forward_pallas,
                                    chunk_len=4))
    out, hn, cn = jax.block_until_ready(fwd(x, params, h0, c0))

    assert out.shape == (seq_len, batch_size, 2 * hidden)
    assert hn.shape == (num_layers * 2, batch_size, hidden)
    assert cn.shape == (num_layers * 2, batch_size, hidden)

    # Correctness check vs. pure-JAX reference (both use f32 HIGHEST matmuls,
    # so only op-ordering differences remain -> tight tolerance).
    out_r, hn_r, cn_r = bidirectional_lstm_forward_ref(x, params, h0, c0)
    np.testing.assert_allclose(np.asarray(out), np.asarray(out_r),
                               rtol=1e-3, atol=1e-3)
    np.testing.assert_allclose(np.asarray(hn), np.asarray(hn_r),
                               rtol=1e-3, atol=1e-3)
    np.testing.assert_allclose(np.asarray(cn), np.asarray(cn_r),
                               rtol=1e-3, atol=1e-3)

    print("KERNEL_OK")
</pallas_src>

<mosaic_0001>
module attributes {stable_mosaic.version = 11 : i64} {
  func.func @_bidir_lstm_layer_kernel(%arg0: i32, %arg1: memref<4x4x128xf32, #tpu.memory_space<vmem>>, %arg2: memref<32x256xf32, #tpu.memory_space<vmem>>, %arg3: memref<4x32xf32, #tpu.memory_space<vmem>>, %arg4: memref<4x32xf32, #tpu.memory_space<vmem>>, %arg5: memref<4x4x32xf32, #tpu.memory_space<vmem>>, %arg6: memref<4x32xf32, #tpu.memory_space<vmem>>, %arg7: memref<4x32xf32, #tpu.memory_space<vmem>>, %arg8: memref<4x32xf32, #tpu.memory_space<vmem>>, %arg9: memref<4x32xf32, #tpu.memory_space<vmem>>) attributes {dimension_semantics = [#tpu.dimension_semantics<arbitrary>], iteration_bounds = array<i64: 2>, scalar_prefetch = 0 : i64, scratch_operands = 2 : i64, tpu.core_type = #tpu.core_type<tc>, window_params = [{transform_indices = @transform_0, window_bounds = array<i64: 4, 4, 128>}, {pipeline_mode = #tpu.pipeline_mode<synchronous>, transform_indices = @transform_1, window_bounds = array<i64: 32, 256>}, {pipeline_mode = #tpu.pipeline_mode<synchronous>, transform_indices = @transform_2, window_bounds = array<i64: 4, 32>}, {pipeline_mode = #tpu.pipeline_mode<synchronous>, transform_indices = @transform_3, window_bounds = array<i64: 4, 32>}, {transform_indices = @transform_4, window_bounds = array<i64: 4, 4, 32>}, {pipeline_mode = #tpu.pipeline_mode<synchronous>, transform_indices = @transform_5, window_bounds = array<i64: 4, 32>}, {pipeline_mode = #tpu.pipeline_mode<synchronous>, transform_indices = @transform_6, window_bounds = array<i64: 4, 32>}]} {
    %c0_i32 = arith.constant 0 : i32
    %0 = arith.cmpi eq, %arg0, %c0_i32 : i32
    %1 = arith.extui %0 : i1 to i32
    %c0_i32_0 = arith.constant 0 : i32
    %2 = arith.cmpi ne, %1, %c0_i32_0 : i32
    scf.if %2 {
      %c0_37 = arith.constant 0 : index
      %c0_38 = arith.constant 0 : index
      %122 = vector.load %arg3[%c0_37, %c0_38] : memref<4x32xf32, #tpu.memory_space<vmem>>, vector<4x32xf32>
      %c0_39 = arith.constant 0 : index
      %c0_40 = arith.constant 0 : index
      %123 = vector.load %arg8[%c0_39, %c0_40] : memref<4x32xf32, #tpu.memory_space<vmem>>, vector<4x32xf32>
      tpu.vector_store %arg8[%c0_39, %c0_40], %122 {strides = array<i32>} : memref<4x32xf32, #tpu.memory_space<vmem>>, vector<4x32xf32>,
      %c0_41 = arith.constant 0 : index
      %c0_42 = arith.constant 0 : index
      %124 = vector.load %arg4[%c0_41, %c0_42] : memref<4x32xf32, #tpu.memory_space<vmem>>, vector<4x32xf32>
      %c0_43 = arith.constant 0 : index
      %c0_44 = arith.constant 0 : index
      %125 = vector.load %arg9[%c0_43, %c0_44] : memref<4x32xf32, #tpu.memory_space<vmem>>, vector<4x32xf32>
      tpu.vector_store %arg9[%c0_43, %c0_44], %124 {strides = array<i32>} : memref<4x32xf32, #tpu.memory_space<vmem>>, vector<4x32xf32>,
    } else {
    }
    %c0 = arith.constant 0 : index
    %c0_1 = arith.constant 0 : index
    %3 = vector.load %arg2[%c0, %c0_1] : memref<32x256xf32, #tpu.memory_space<vmem>>, vector<32x256xf32>
    %4 = tpu.iota {dimensions = array<i32: 0>} : vector<4x128xi32>
    %c2_i32 = arith.constant 2 : i32
    %5 = vector.broadcast %c2_i32 : i32 to vector<4x128xi32>
    %6 = arith.cmpi slt, %4, %5 : vector<4x128xi32>
    %c0_2 = arith.constant 0 : index
    %c0_3 = arith.constant 0 : index
    %7 = vector.load %arg8[%c0_2, %c0_3] : memref<4x32xf32, #tpu.memory_space<vmem>>, vector<4x32xf32>
    %c0_4 = arith.constant 0 : index
    %c0_5 = arith.constant 0 : index
    %8 = vector.load %arg9[%c0_4, %c0_5] : memref<4x32xf32, #tpu.memory_space<vmem>>, vector<4x32xf32>
    %c0_i32_6 = arith.constant 0 : i32
    %cst = arith.constant dense<0.000000e+00> : vector<4x256xf32>
    %9 = tpu.matmul %7, %3, %cst {dimension_numbers = #tpu.dot_dimension_numbers<[1], [0], [0], [1], [0, 0, 1, 1], [], []>, precision = #tpu.contract_precision<fp32>} : vector<4x32xf32>, vector<32x256xf32>, vector<4x256xf32> -> vector<4x256xf32>
    %10 = arith.index_cast %c0_i32_6 : i32 to index
    %c0_7 = arith.constant 0 : index
    %c0_8 = arith.constant 0 : index
    %11 = vector.load %arg1[%10, %c0_7, %c0_8] : memref<4x4x128xf32, #tpu.memory_space<vmem>>, vector<1x4x128xf32>
    %12 = vector.shape_cast %11 : vector<1x4x128xf32> to vector<4x128xf32>
    %13 = vector.extract_strided_slice %9 {offsets = [0, 0], sizes = [4, 128], strides = [1, 1]} : vector<4x256xf32> to vector<4x128xf32>
    %14 = vector.extract_strided_slice %9 {offsets = [0, 128], sizes = [4, 128], strides = [1, 1]} : vector<4x256xf32> to vector<4x128xf32>
    %15 = arith.select %6, %13, %14 : vector<4x128xi1>, vector<4x128xf32>
    %16 = arith.addf %12, %15 : vector<4x128xf32>
    %17 = arith.negf %16 : vector<4x128xf32>
    %18 = math.exp %17 : vector<4x128xf32>
    %cst_9 = arith.constant 1.000000e+00 : f32
    %19 = vector.broadcast %cst_9 : f32 to vector<4x128xf32>
    %20 = arith.addf %19, %18 : vector<4x128xf32>
    %21 = arith.divf %19, %20 : vector<4x128xf32>
    %22 = vector.extract_strided_slice %21 {offsets = [0, 0], sizes = [4, 32], strides = [1, 1]} : vector<4x128xf32> to vector<4x32xf32>
    %23 = vector.extract_strided_slice %21 {offsets = [0, 32], sizes = [4, 32], strides = [1, 1]} : vector<4x128xf32> to vector<4x32xf32>
    %24 = vector.extract_strided_slice %21 {offsets = [0, 96], sizes = [4, 32], strides = [1, 1]} : vector<4x128xf32> to vector<4x32xf32>
    %25 = vector.extract_strided_slice %16 {offsets = [0, 64], sizes = [4, 32], strides = [1, 1]} : vector<4x128xf32> to vector<4x32xf32>
    %26 = math.tanh %25 : vector<4x32xf32>
    %27 = arith.mulf %23, %8 : vector<4x32xf32>
    %28 = arith.mulf %22, %26 : vector<4x32xf32>
    %29 = arith.addf %27, %28 : vector<4x32xf32>
    %30 = math.tanh %29 : vector<4x32xf32>
    %31 = arith.mulf %24, %30 : vector<4x32xf32>
    %32 = arith.index_cast %c0_i32_6 : i32 to index
    %c0_10 = arith.constant 0 : index
    %c0_11 = arith.constant 0 : index
    %33 = vector.load %arg5[%32, %c0_10, %c0_11] : memref<4x4x32xf32, #tpu.memory_space<vmem>>, vector<1x4x32xf32>
    %34 = vector.shape_cast %33 : vector<1x4x32xf32> to vector<4x32xf32>
    %35 = vector.shape_cast %31 : vector<4x32xf32> to vector<1x4x32xf32>
    tpu.vector_store %arg5[%32, %c0_10, %c0_11], %35 {strides = array<i32>} : memref<4x4x32xf32, #tpu.memory_space<vmem>>, vector<1x4x32xf32>,
    %c1_i32 = arith.constant 1 : i32
    %cst_12 = arith.constant dense<0.000000e+00> : vector<4x256xf32>
    %36 = tpu.matmul %31, %3, %cst_12 {dimension_numbers = #tpu.dot_dimension_numbers<[1], [0], [0], [1], [0, 0, 1, 1], [], []>, precision = #tpu.contract_precision<fp32>} : vector<4x32xf32>, vector<32x256xf32>, vector<4x256xf32> -> vector<4x256xf32>
    %37 = arith.index_cast %c1_i32 : i32 to index
    %c0_13 = arith.constant 0 : index
    %c0_14 = arith.constant 0 : index
    %38 = vector.load %arg1[%37, %c0_13, %c0_14] : memref<4x4x128xf32, #tpu.memory_space<vmem>>, vector<1x4x128xf32>
    %39 = vector.shape_cast %38 : vector<1x4x128xf32> to vector<4x128xf32>
    %40 = vector.extract_strided_slice %36 {offsets = [0, 0], sizes = [4, 128], strides = [1, 1]} : vector<4x256xf32> to vector<4x128xf32>
    %41 = vector.extract_strided_slice %36 {offsets = [0, 128], sizes = [4, 128], strides = [1, 1]} : vector<4x256xf32> to vector<4x128xf32>
    %42 = arith.select %6, %40, %41 : vector<4x128xi1>, vector<4x128xf32>
    %43 = arith.addf %39, %42 : vector<4x128xf32>
    %44 = arith.negf %43 : vector<4x128xf32>
    %45 = math.exp %44 : vector<4x128xf32>
    %cst_15 = arith.constant 1.000000e+00 : f32
    %46 = vector.broadcast %cst_15 : f32 to vector<4x128xf32>
    %47 = arith.addf %46, %45 : vector<4x128xf32>
    %48 = arith.divf %46, %47 : vector<4x128xf32>
    %49 = vector.extract_strided_slice %48 {offsets = [0, 0], sizes = [4, 32], strides = [1, 1]} : vector<4x128xf32> to vector<4x32xf32>
    %50 = vector.extract_strided_slice %48 {offsets = [0, 32], sizes = [4, 32], strides = [1, 1]} : vector<4x128xf32> to vector<4x32xf32>
    %51 = vector.extract_strided_slice %48 {offsets = [0, 96], sizes = [4, 32], strides = [1, 1]} : vector<4x128xf32> to vector<4x32xf32>
    %52 = vector.extract_strided_slice %43 {offsets = [0, 64], sizes = [4, 32], strides = [1, 1]} : vector<4x128xf32> to vector<4x32xf32>
    %53 = math.tanh %52 : vector<4x32xf32>
    %54 = arith.mulf %50, %29 : vector<4x32xf32>
    %55 = arith.mulf %49, %53 : vector<4x32xf32>
    %56 = arith.addf %54, %55 : vector<4x32xf32>
    %57 = math.tanh %56 : vector<4x32xf32>
    %58 = arith.mulf %51, %57 : vector<4x32xf32>
    %59 = arith.index_cast %c1_i32 : i32 to index
    %c0_16 = arith.constant 0 : index
    %c0_17 = arith.constant 0 : index
    %60 = vector.load %arg5[%59, %c0_16, %c0_17] : memref<4x4x32xf32, #tpu.memory_space<vmem>>, vector<1x4x32xf32>
    %61 = vector.shape_cast %60 : vector<1x4x32xf32> to vector<4x32xf32>
    %62 = vector.shape_cast %58 : vector<4x32xf32> to vector<1x4x32xf32>
    tpu.vector_store %arg5[%59, %c0_16, %c0_17], %62 {strides = array<i32>} : memref<4x4x32xf32, #tpu.memory_space<vmem>>, vector<1x4x32xf32>,
    %c2_i32_18 = arith.constant 2 : i32
    %cst_19 = arith.constant dense<0.000000e+00> : vector<4x256xf32>
    %63 = tpu.matmul %58, %3, %cst_19 {dimension_numbers = #tpu.dot_dimension_numbers<[1], [0], [0], [1], [0, 0, 1, 1], [], []>, precision = #tpu.contract_precision<fp32>} : vector<4x32xf32>, vector<32x256xf32>, vector<4x256xf32> -> vector<4x256xf32>
    %64 = arith.index_cast %c2_i32_18 : i32 to index
    %c0_20 = arith.constant 0 : index
    %c0_21 = arith.constant 0 : index
    %65 = vector.load %arg1[%64, %c0_20, %c0_21] : memref<4x4x128xf32, #tpu.memory_space<vmem>>, vector<1x4x128xf32>
    %66 = vector.shape_cast %65 : vector<1x4x128xf32> to vector<4x128xf32>
    %67 = vector.extract_strided_slice %63 {offsets = [0, 0], sizes = [4, 128], strides = [1, 1]} : vector<4x256xf32> to vector<4x128xf32>
    %68 = vector.extract_strided_slice %63 {offsets = [0, 128], sizes = [4, 128], strides = [1, 1]} : vector<4x256xf32> to vector<4x128xf32>
    %69 = arith.select %6, %67, %68 : vector<4x128xi1>, vector<4x128xf32>
    %70 = arith.addf %66, %69 : vector<4x128xf32>
    %71 = arith.negf %70 : vector<4x128xf32>
    %72 = math.exp %71 : vector<4x128xf32>
    %cst_22 = arith.constant 1.000000e+00 : f32
    %73 = vector.broadcast %cst_22 : f32 to vector<4x128xf32>
    %74 = arith.addf %73, %72 : vector<4x128xf32>
    %75 = arith.divf %73, %74 : vector<4x128xf32>
    %76 = vector.extract_strided_slice %75 {offsets = [0, 0], sizes = [4, 32], strides = [1, 1]} : vector<4x128xf32> to vector<4x32xf32>
    %77 = vector.extract_strided_slice %75 {offsets = [0, 32], sizes = [4, 32], strides = [1, 1]} : vector<4x128xf32> to vector<4x32xf32>
    %78 = vector.extract_strided_slice %75 {offsets = [0, 96], sizes = [4, 32], strides = [1, 1]} : vector<4x128xf32> to vector<4x32xf32>
    %79 = vector.extract_strided_slice %70 {offsets = [0, 64], sizes = [4, 32], strides = [1, 1]} : vector<4x128xf32> to vector<4x32xf32>
    %80 = math.tanh %79 : vector<4x32xf32>
    %81 = arith.mulf %77, %56 : vector<4x32xf32>
    %82 = arith.mulf %76, %80 : vector<4x32xf32>
    %83 = arith.addf %81, %82 : vector<4x32xf32>
    %84 = math.tanh %83 : vector<4x32xf32>
    %85 = arith.mulf %78, %84 : vector<4x32xf32>
    %86 = arith.index_cast %c2_i32_18 : i32 to index
    %c0_23 = arith.constant 0 : index
    %c0_24 = arith.constant 0 : index
    %87 = vector.load %arg5[%86, %c0_23, %c0_24] : memref<4x4x32xf32, #tpu.memory_space<vmem>>, vector<1x4x32xf32>
    %88 = vector.shape_cast %87 : vector<1x4x32xf32> to vector<4x32xf32>
    %89 = vector.shape_cast %85 : vector<4x32xf32> to vector<1x4x32xf32>
    tpu.vector_store %arg5[%86, %c0_23, %c0_24], %89 {strides = array<i32>} : memref<4x4x32xf32, #tpu.memory_space<vmem>>, vector<1x4x32xf32>,
    %c3_i32 = arith.constant 3 : i32
    %cst_25 = arith.constant dense<0.000000e+00> : vector<4x256xf32>
    %90 = tpu.matmul %85, %3, %cst_25 {dimension_numbers = #tpu.dot_dimension_numbers<[1], [0], [0], [1], [0, 0, 1, 1], [], []>, precision = #tpu.contract_precision<fp32>} : vector<4x32xf32>, vector<32x256xf32>, vector<4x256xf32> -> vector<4x256xf32>
    %91 = arith.index_cast %c3_i32 : i32 to index
    %c0_26 = arith.constant 0 : index
    %c0_27 = arith.constant 0 : index
    %92 = vector.load %arg1[%91, %c0_26, %c0_27] : memref<4x4x128xf32, #tpu.memory_space<vmem>>, vector<1x4x128xf32>
    %93 = vector.shape_cast %92 : vector<1x4x128xf32> to vector<4x128xf32>
    %94 = vector.extract_strided_slice %90 {offsets = [0, 0], sizes = [4, 128], strides = [1, 1]} : vector<4x256xf32> to vector<4x128xf32>
    %95 = vector.extract_strided_slice %90 {offsets = [0, 128], sizes = [4, 128], strides = [1, 1]} : vector<4x256xf32> to vector<4x128xf32>
    %96 = arith.select %6, %94, %95 : vector<4x128xi1>, vector<4x128xf32>
    %97 = arith.addf %93, %96 : vector<4x128xf32>
    %98 = arith.negf %97 : vector<4x128xf32>
    %99 = math.exp %98 : vector<4x128xf32>
    %cst_28 = arith.constant 1.000000e+00 : f32
    %100 = vector.broadcast %cst_28 : f32 to vector<4x128xf32>
    %101 = arith.addf %100, %99 : vector<4x128xf32>
    %102 = arith.divf %100, %101 : vector<4x128xf32>
    %103 = vector.extract_strided_slice %102 {offsets = [0, 0], sizes = [4, 32], strides = [1, 1]} : vector<4x128xf32> to vector<4x32xf32>
    %104 = vector.extract_strided_slice %102 {offsets = [0, 32], sizes = [4, 32], strides = [1, 1]} : vector<4x128xf32> to vector<4x32xf32>
    %105 = vector.extract_strided_slice %102 {offsets = [0, 96], sizes = [4, 32], strides = [1, 1]} : vector<4x128xf32> to vector<4x32xf32>
    %106 = vector.extract_strided_slice %97 {offsets = [0, 64], sizes = [4, 32], strides = [1, 1]} : vector<4x128xf32> to vector<4x32xf32>
    %107 = math.tanh %106 : vector<4x32xf32>
    %108 = arith.mulf %104, %83 : vector<4x32xf32>
    %109 = arith.mulf %103, %107 : vector<4x32xf32>
    %110 = arith.addf %108, %109 : vector<4x32xf32>
    %111 = math.tanh %110 : vector<4x32xf32>
    %112 = arith.mulf %105, %111 : vector<4x32xf32>
    %113 = arith.index_cast %c3_i32 : i32 to index
    %c0_29 = arith.constant 0 : index
    %c0_30 = arith.constant 0 : index
    %114 = vector.load %arg5[%113, %c0_29, %c0_30] : memref<4x4x32xf32, #tpu.memory_space<vmem>>, vector<1x4x32xf32>
    %115 = vector.shape_cast %114 : vector<1x4x32xf32> to vector<4x32xf32>
    %116 = vector.shape_cast %112 : vector<4x32xf32> to vector<1x4x32xf32>
    tpu.vector_store %arg5[%113, %c0_29, %c0_30], %116 {strides = array<i32>} : memref<4x4x32xf32, #tpu.memory_space<vmem>>, vector<1x4x32xf32>,
    %c4_i32 = arith.constant 4 : i32
    %c0_31 = arith.constant 0 : index
    %c0_32 = arith.constant 0 : index
    %117 = vector.load %arg8[%c0_31, %c0_32] : memref<4x32xf32, #tpu.memory_space<vmem>>, vector<4x32xf32>
    tpu.vector_store %arg8[%c0_31, %c0_32], %112 {strides = array<i32>} : memref<4x32xf32, #tpu.memory_space<vmem>>, vector<4x32xf32>,
    %c0_33 = arith.constant 0 : index
    %c0_34 = arith.constant 0 : index
    %118 = vector.load %arg9[%c0_33, %c0_34] : memref<4x32xf32, #tpu.memory_space<vmem>>, vector<4x32xf32>
    tpu.vector_store %arg9[%c0_33, %c0_34], %110 {strides = array<i32>} : memref<4x32xf32, #tpu.memory_space<vmem>>, vector<4x32xf32>,
    %c1_i32_35 = arith.constant 1 : i32
    %119 = arith.cmpi eq, %arg0, %c1_i32_35 : i32
    %120 = arith.extui %119 : i1 to i32
    %c0_i32_36 = arith.constant 0 : i32
    %121 = arith.cmpi ne, %120, %c0_i32_36 : i32
    scf.if %121 {
      %c0_37 = arith.constant 0 : index
      %c0_38 = arith.constant 0 : index
      %122 = vector.load %arg6[%c0_37, %c0_38] : memref<4x32xf32, #tpu.memory_space<vmem>>, vector<4x32xf32>
      tpu.vector_store %arg6[%c0_37, %c0_38], %112 {strides = array<i32>} : memref<4x32xf32, #tpu.memory_space<vmem>>, vector<4x32xf32>,
      %c0_39 = arith.constant 0 : index
      %c0_40 = arith.constant 0 : index
      %123 = vector.load %arg7[%c0_39, %c0_40] : memref<4x32xf32, #tpu.memory_space<vmem>>, vector<4x32xf32>
      tpu.vector_store %arg7[%c0_39, %c0_40], %110 {strides = array<i32>} : memref<4x32xf32, #tpu.memory_space<vmem>>, vector<4x32xf32>,
    } else {
    }
    return
  }
  func.func @transform_0(%arg0: i32) -> (i32, i32, i32) {
    %c0_i32 = arith.constant 0 : i32
    %c0_i32_0 = arith.constant 0 : i32
    %c0_i32_1 = arith.constant 0 : i32
    return %arg0, %c0_i32, %c0_i32_0 : i32, i32, i32
  }
  func.func @transform_1(%arg0: i32) -> (i32, i32) {
    %c0_i32 = arith.constant 0 : i32
    %c0_i32_0 = arith.constant 0 : i32
    %c0_i32_1 = arith.constant 0 : i32
    return %c0_i32, %c0_i32_0 : i32, i32
  }
  func.func @transform_2(%arg0: i32) -> (i32, i32) {
    %c0_i32 = arith.constant 0 : i32
    %c0_i32_0 = arith.constant 0 : i32
    %c0_i32_1 = arith.constant 0 : i32
    return %c0_i32, %c0_i32_0 : i32, i32
  }
  func.func @transform_3(%arg0: i32) -> (i32, i32) {
    %c0_i32 = arith.constant 0 : i32
    %c0_i32_0 = arith.constant 0 : i32
    %c0_i32_1 = arith.constant 0 : i32
    return %c0_i32, %c0_i32_0 : i32, i32
  }
  func.func @transform_4(%arg0: i32) -> (i32, i32, i32) {
    %c0_i32 = arith.constant 0 : i32
    %c0_i32_0 = arith.constant 0 : i32
    %c0_i32_1 = arith.constant 0 : i32
    return %arg0, %c0_i32, %c0_i32_0 : i32, i32, i32
  }
  func.func @transform_5(%arg0: i32) -> (i32, i32) {
    %c0_i32 = arith.constant 0 : i32
    %c0_i32_0 = arith.constant 0 : i32
    %c0_i32_1 = arith.constant 0 : i32
    return %c0_i32, %c0_i32_0 : i32, i32
  }
  func.func @transform_6(%arg0: i32) -> (i32, i32) {
    %c0_i32 = arith.constant 0 : i32
    %c0_i32_0 = arith.constant 0 : i32
    %c0_i32_1 = arith.constant 0 : i32
    return %c0_i32, %c0_i32_0 : i32, i32
  }
}

</mosaic_0001>

<bundles_post_ra>
// kernel: bidirectional_lstm_forward_pallas.2
= control target key start
LH: loop header
LB: loop body
LE: loop exit
PB: predicated region body
PF: predicated region fallthrough
CT: control target
= control target key end

     0   :  { %s2787_s21 = smov 0   ;;  %s3227_s0 = inlined_call_operand.vmem [shape: f32[8,4,128], index: 0, kind: input, shape index: {}]   ;;  %s3228_s1 = inlined_call_operand.vmem [shape: f32[32,256], index: 1, kind: input, shape index: {}]   ;;  %s3229_s2 = inlined_call_operand.vmem [shape: f32[4,32], index: 2, kind: input, shape index: {}]   ;;  %s3230_s3 = inlined_call_operand.vmem [shape: f32[4,32], index: 3, kind: input, shape index: {}]   ;;  %s3231_s4 = inlined_call_operand.vmem [shape: f32[8,4,32], index: 4, kind: output, shape index: {0}]   ;;  %s3232_s5 = inlined_call_operand.vmem [shape: f32[4,32], index: 5, kind: output, shape index: {1}]   ;;  %s3233_s6 = inlined_call_operand.vmem [shape: f32[4,32], index: 6, kind: output, shape index: {2}]  }
   0x1 LB: > { %s2793_s22 = sadd.s32 4294967295, %s2746_s21   ;;  %p2677_p0 = scmp.ge.s32.totalorder %s2746_s21, 1  ;;  %s2746_s21 = sphi %s2787_s21, %s17_s21  }
   0x2   : > { %p208_p1 = scmp.lt.s32.totalorder %s2746_s21, 3 }
   0x4   : > { %p209_p2 = pnand %p2677_p0, %p208_p1 }
   0x5   : > { %s2678_s23 = sshll.u32 (!%p209_p2), %s2793_s22, 2  ;;  %p2682_p4 = scmp.ne.s32.totalorder (!%p209_p2), %s2793_s22, 0 }
   0x6   : > { %212 = sbr.rel (%p209_p2) target bundleno = 2930 (0xb72), region = 36  ;;  %p239_p3 = scmp.lt.s32.totalorder (!%p209_p2), %s2678_s23, 7 }
   0xb   : > { %s3235_s23 = smov (!%p239_p3, %s2678_s23), 7  ;;  %253 = sbr.rel (%p2682_p4) target bundleno = 19 (0x13), region = 40 }
   0xc   : > { %s2679_s24 = sshll.u32 %s3235_s23, 2 }
   0xd   : > { %s2801_s27 = scalar_lea.vmem %s3227_s0, %s2679_s24  ;;  %s2806_s30 = scalar_lea.vmem %s3231_s4, %s2679_s24 }
  0x10   : > { %v254_v0 = vld [vmem:[%s3229_s2] sm:$0xf]  ;;  %vm255_vm0 = vcmask 257024  }
  0x11   : > { %v257_v1 = vld [vmem:[%s3230_s3] sm:$0xf]  ;;  %256 = vst.msk [vmem:[#allocation2] sm:$0xf] %vm255_vm0, %v254_v0 }
  0x12   : > { %258 = vst.msk [vmem:[#allocation3] sm:$0xf] %vm255_vm0, %v257_v1 }
  0x13 PF: > { %v266_v2 = vld [vmem:[%s3228_s1 + $0x38] sm:$0xff]  ;;  %v265_v3 = vld [vmem:[%s3228_s1 + $0x30] sm:$0xff]  ;;  %v264_v4 = vld [vmem:[%s3228_s1 + $0x28] sm:$0xff]  ;;  %vm272_vm1 = vcmask 261120   ;;  %v2748_v11 = vmov 0.0   ;;  %s2749_s7 = smov 64  }
  0x14   : > { %v2824_v5 = vand.u32 4294901760, %v266_v2  ;;  %v2826_v6 = vand.u32 4294901760, %v265_v3  ;;  %v2828_v7 = vand.u32 4294901760, %v264_v4  ;;  %v263_v8 = vld [vmem:[%s3228_s1 + $0x20] sm:$0xff]  ;;  %v262_v9 = vld [vmem:[%s3228_s1 + $0x18] sm:$0xff]  ;;  %v261_v10 = vld [vmem:[%s3228_s1 + $0x10] sm:$0xff]  ;;  %348 = vmatprep.mubr.f32.mxu0 %v2748_v11  ;;  %464 = vmatprep.mubr.f32.mxu1 %v2748_v11 }
  0x15   : > { %v2841_v12 = vand.u32 4294901760, %v263_v8  ;;  %v2843_v13 = vand.u32 4294901760, %v262_v9  ;;  %v2845_v14 = vand.u32 4294901760, %v261_v10  ;;  %v260_v15 = vld [vmem:[%s3228_s1 + $0x8] sm:$0xff]  ;;  %v259_v16 = vld [vmem:[%s3228_s1] sm:$0xff]  ;;  %s2750_s8 = smov 32  }
  0x16   : > { %301 = vmatprep.subr.mxu0 %v2824_v5  ;;  %v2854_v17 = vand.u32 4294901760, %v260_v15  ;;  %v2857_v18 = vsub.f32 %v266_v2, %v2824_v5  ;;  %v2859_v19 = vand.u32 4294901760, %v259_v16  ;;  %v2862_v20 = vsub.f32 %v265_v3, %v2826_v6  ;;  %p2693_p5 = scmp.ne.s32.totalorder %s2793_s22, 1 }
  0x17   : > { %303 = vmatpush1.msra.mxu0 %v2826_v6  ;;  %v2866_v22 = vsub.f32 %v264_v4, %v2828_v7  ;;  %v2870_v24 = vsub.f32 %v263_v8, %v2841_v12  ;;  %v2873_v25 = vsub.f32 %v262_v9, %v2843_v13  ;;  %v2885_v29 = vsub.f32 %v261_v10, %v2845_v14 }
  0x18   : > { %v270_v21 = vld [vmem:[#allocation2] sm:$0xf]  ;;  %305 = vmatprep.subr.mxu0 %v2828_v7  ;;  %v2877_v26 = vand.u32 4294901760, %v2857_v18  ;;  %v2880_v27 = vand.u32 4294901760, %v2862_v20  ;;  %v2898_v33 = vsub.f32 %v260_v15, %v2854_v17  ;;  %v2938_v51 = vsub.f32 %v259_v16, %v2859_v19 }
  0x19   : > { %v274_v23 = vsel %vm272_vm1, %v270_v21, 0  ;;  %307 = vmatpush1.msra.mxu0 %v2841_v12  ;;  %v2889_v30 = vand.u32 4294901760, %v2866_v22  ;;  %v2892_v31 = vand.u32 4294901760, %v2870_v24  ;;  %v2895_v32 = vand.u32 4294901760, %v2873_v25 }
  0x1a   : > { %v2882_v28 = vand.u32 4294901760, %v274_v23  ;;  %309 = vmatprep.subr.mxu0 %v2843_v13  ;;  %v387_v34 = vsub.f32 %v2857_v18, %v2877_v26  ;;  %v393_v35 = vsub.f32 %v2862_v20, %v2880_v27  ;;  %v2907_v37 = vand.u32 4294901760, %v2885_v29 }
  0x1b   : > { %311 = vmatpush1.msra.mxu0 %v2845_v14  ;;  %v399_v38 = vsub.f32 %v2866_v22, %v2889_v30  ;;  %v405_v39 = vsub.f32 %v2870_v24, %v2892_v31  ;;  %v411_v40 = vsub.f32 %v2873_v25, %v2895_v32  ;;  %v2917_v41 = vand.u32 4294901760, %v2898_v33 }
  0x1c   : > { %v350_v36 = vsub.f32 %v274_v23, %v2882_v28  ;;  %313 = vmatprep.subr.mxu0 %v2854_v17  ;;  %v2920_v42 = vand.u32 4294901760, %v387_v34  ;;  %v2922_v43 = vand.u32 4294901760, %v393_v35  ;;  %v417_v45 = vsub.f32 %v2885_v29, %v2907_v37 }
  0x1d   : > { %315 = vmatpush1.msra.mxu0 %v2859_v19  ;;  %v2927_v46 = vand.u32 4294901760, %v399_v38  ;;  %v2929_v47 = vand.u32 4294901760, %v405_v39  ;;  %v423_v48 = vsub.f32 %v2898_v33, %v2917_v41  ;;  %v2935_v50 = vand.u32 4294901760, %v411_v40  ;;  %v819_v40 = vld [vmem:[%s2801_s27] sm:$0xf] }
  0x1e   : > { %v351_v44 = vand.u32 4294901760, %v350_v36  ;;  %389 = vmatprep.subr.mxu1 %v2920_v42  ;;  %498 = vmatprep.subr.mxu0 %v2857_v18  ;;  %v2941_v52 = vand.u32 4294901760, %v417_v45  ;;  %v2947_v55 = vand.u32 4294901760, %v2938_v51  ;;  %v267_v8 = vlaneseq }
  0x1f   : > { %395 = vmatpush1.msra.mxu1 %v2922_v43  ;;  %v2944_v54 = vand.u32 4294901760, %v423_v48  ;;  %vm854_vm3 = vcmask 257024  }
  0x20   : > { %v352_v49 = vsub.f32 %v350_v36, %v351_v44  ;;  %401 = vmatprep.subr.mxu1 %v2927_v46  ;;  %v429_v56 = vsub.f32 %v2938_v51, %v2947_v55  ;;  %v3016_v23 = vshrl.u32 %v267_v8, 7 }
  0x21   : > { %407 = vmatpush1.msra.mxu1 %v2929_v47 }
  0x22   : > { %v353_v53 = vand.u32 4294901760, %v352_v49  ;;  %413 = vmatprep.subr.mxu1 %v2935_v50  ;;  %v2957_v57 = vand.u32 4294901760, %v429_v56  ;;  %vm269_vm2 = vcmp.lt.s32.totalorder %v3016_v23, 2  ;;  %v271_v49 = vld [vmem:[#allocation3] sm:$0xf] }
  0x23   : > { %419 = vmatpush1.msra.mxu1 %v2941_v52 }
  0x24   : > { %354 = vmatmul.mubr.f32.vlgmr.msra.gmra.mxu0 %v353_v53  ;;  %425 = vmatprep.subr.mxu1 %v2944_v54 }
  0x25   : > { %501 = vmatpush1.msra.mxu0 %v2862_v20  ;;  %552 = vmatprep.mubr.f32.mxu0 %v2748_v11 }
  0x26   : > { %504 = vmatprep.subr.mxu0 %v2866_v22  ;;  %431 = vmatpush1.msra.mxu1 %v2957_v57 }
  0x27   : > { %507 = vmatpush1.msra.mxu0 %v2870_v24  ;;  %466 = vmatmul.mubr.f32.vlgmr.msra.gmra.mxu1 %v2882_v28 }
  0x28   : > { %510 = vmatprep.subr.mxu0 %v2873_v25  ;;  %586 = vmatprep.subr.mxu1 %v2824_v5 }
  0x29   : > { %513 = vmatpush1.msra.mxu0 %v2885_v29  ;;  %588 = vmatpush1.msra.mxu1 %v2826_v6 }
  0x2a   : > { %516 = vmatprep.subr.mxu0 %v2898_v33  ;;  %590 = vmatprep.subr.mxu1 %v2828_v7 }
  0x2b   : > { %519 = vmatpush1.msra.mxu0 %v2938_v51  ;;  %592 = vmatpush1.msra.mxu1 %v2841_v12 }
  0x2c   : > { %555 = vmatmul.mubr.f32.vlgmr.msra.gmra.mxu0 %v350_v36  ;;  %670 = vmatprep.subr.mxu0 %v2877_v26 }
  0x2d   : > { %674 = vmatpush1.msra.mxu0 %v2880_v27  ;;  %594 = vmatprep.subr.mxu1 %v2843_v13 }
  0x2e   : > { %678 = vmatprep.subr.mxu0 %v2889_v30  ;;  %596 = vmatpush1.msra.mxu1 %v2845_v14 }
  0x2f   : > { %682 = vmatpush1.msra.mxu0 %v2892_v31  ;;  %598 = vmatprep.subr.mxu1 %v2854_v17 }
  0x30   : > { %686 = vmatprep.subr.mxu0 %v2895_v32  ;;  %600 = vmatpush1.msra.mxu1 %v2859_v19 }
  0x31   : > { %633 = vmatprep.mubr.f32.mxu1 %v2748_v11  ;;  %690 = vmatpush1.msra.mxu0 %v2907_v37 }
  0x32   : > { %637 = vmatmul.mubr.f32.vlgmr.msra.gmra.mxu1 %v351_v44  ;;  %694 = vmatprep.subr.mxu0 %v2917_v41 }
  0x33   : > { %764 = vmatprep.subr.mxu1 %v2824_v5  ;;  %698 = vmatpush1.msra.mxu0 %v2947_v55 }
  0x34   : > { %731 = vmatprep.mubr.f32.mxu0 %v2748_v11  ;;  %766 = vmatpush1.msra.mxu1 %v2826_v6 }
  0x35   : > { %733 = vmatmul.mubr.f32.vlgmr.msra.gmra.mxu0 %v2882_v28  ;;  %768 = vmatprep.subr.mxu1 %v2828_v7 }
  0x36   : > { %770 = vmatpush1.msra.mxu1 %v2841_v12  ;;  %811 = vmatprep.mubr.f32.mxu1 %v2748_v11 }
  0x37   : > { %772 = vmatprep.subr.mxu1 %v2843_v13  ;;  %883 = vmatprep.subr.mxu0 %v2824_v5 }
  0x38   : > { %774 = vmatpush1.msra.mxu1 %v2845_v14  ;;  %885 = vmatpush1.msra.mxu0 %v2826_v6 }
  0x39   : > { %776 = vmatprep.subr.mxu1 %v2854_v17  ;;  %887 = vmatprep.subr.mxu0 %v2828_v7 }
  0x3a   : > { %778 = vmatpush1.msra.mxu1 %v2859_v19  ;;  %889 = vmatpush1.msra.mxu0 %v2841_v12 }
  0x3b   : > { %813 = vmatmul.mubr.f32.vlgmr.msra.gmra.mxu1 %v2882_v28  ;;  %971 = vmatprep.subr.mxu1 %v2920_v42 }
  0x3c   : > { %977 = vmatpush1.msra.mxu1 %v2922_v43  ;;  %1046 = vmatprep.mubr.f32.mxu1 %v2748_v11 }
  0x3d   : > { %983 = vmatprep.subr.mxu1 %v2927_v46  ;;  %891 = vmatprep.subr.mxu0 %v2843_v13 }
  0x3e   : > { %989 = vmatpush1.msra.mxu1 %v2929_v47  ;;  %893 = vmatpush1.msra.mxu0 %v2845_v14 }
  0x3f   : > { %995 = vmatprep.subr.mxu1 %v2935_v50  ;;  %895 = vmatprep.subr.mxu0 %v2854_v17 }
  0x40   : > { %1001 = vmatpush1.msra.mxu1 %v2941_v52  ;;  %897 = vmatpush1.msra.mxu0 %v2859_v19 }
  0x41   : > { %1007 = vmatprep.subr.mxu1 %v2944_v54  ;;  %930 = vmatprep.mubr.f32.mxu0 %v2748_v11 }
  0x42   : > { %1013 = vmatpush1.msra.mxu1 %v2957_v57  ;;  %1080 = vmatprep.subr.mxu0 %v2857_v18 }
  0x43   : > { %1168 = vmatprep.subr.mxu1 %v2824_v5 }
  0xe4   : > { %v355_v58 = vpop.f32.mrf.mxu0 }
  0xe6   : > { %v357_v59 = vpop.f32.mrf.mxu0 }
  0xe7   : > { %v467_v60 = vpop.f32.mrf.mxu1 }
  0xe8   : > { %v468_v63 = vadd.f32 %v467_v60, %v355_v58 }
  0xe9   : > { %v469_v61 = vpop.f32.mrf.mxu1 }
  0xea   : > { %v470_v0 = vadd.f32 %v469_v61, %v357_v59 }
  0xec   : > { %v556_v62 = vpop.f32.mrf.mxu0 }
  0xed   : > { %v557_v9 = vadd.f32 %v556_v62, %v468_v63 }
  0xee   : > { %v558_v2 = vpop.f32.mrf.mxu0 }
  0xef   : > { %v559_v10 = vadd.f32 %v558_v2, %v470_v0 }
  0xf2   : > { %v638_v1 = vpop.f32.mrf.mxu1 }
  0xf3   : > { %v639_v15 = vadd.f32 %v638_v1, %v557_v9 }
  0xf4   : > { %v640_v3 = vpop.f32.mrf.mxu1 }
  0xf5   : > { %v734_v4 = vpop.f32.mrf.mxu0  ;;  %v641_v16 = vadd.f32 %v640_v3, %v559_v10 }
  0xf6   : > { %v735_v34 = vadd.f32 %v734_v4, %v639_v15 }
  0xf7   : > { %v736_v21 = vpop.f32.mrf.mxu0 }
  0xf8   : > { %v737_v35 = vadd.f32 %v736_v21, %v641_v16 }
  0xfb   : > { %v814_v28 = vpop.f32.mrf.mxu1 }
  0xfc   : > { %v815_v38 = vadd.f32 %v814_v28, %v735_v34 }
  0xfd   : > { %v816_v36 = vpop.f32.mrf.mxu1 }
  0xfe   : > { %v817_v39 = vadd.f32 %v816_v36, %v737_v35 }
 0x100   : > { %v820_v44 = vsel %vm269_vm2, %v815_v38, %v817_v39 }
 0x101   : > { %v821_v45 = vadd.f32 %v820_v44, %v819_v40 }
 0x103   : > { %2708 = vtanh.f32 %v821_v45  ;;  %v2683_v53 = vmul.f32 -1.442695, %v821_v45 }
 0x105   : > { %2710 = vpow2.f32 %v2683_v53 }
 0x110   : > { %v2709_v48 = vpop.eup %2708 }
 0x111   : > { %835 = vrot.lane.b32.xlu0 %v2709_v48, %s2749_s7 }
 0x112   : > { %v2711_v56 = vpop.eup %2710 }
 0x113   : > { %v825_v58 = vadd.f32 1.0, %v2711_v56 }
 0x115   : > { %830 = vrot.lane.b32.xlu0 %v271_v49, %s2750_s8  ;;  %2712 = vrcp.f32 %v825_v58 }
 0x122   : > { %v2713_v59 = vpop.eup %2712 }
 0x183   : > { %v836_v60 = vpop.permute.xlu0 %835 }
 0x184   : > { %v838_v61 = vmul.f32 %v2713_v59, %v836_v60 }
 0x186   : > { %840 = vrot.lane.b32.xlu1 %v838_v61, %s2750_s8 }
 0x187   : > { %v831_v62 = vpop.permute.xlu0 %830 }
 0x188   : > { %v833_v63 = vmul.f32 %v2713_v59, %v831_v62 }
 0x1f8   : > { %v841_v0 = vpop.permute.xlu1 %840 }
 0x1f9   : > { %v3025_v1 = vadd.f32 %v841_v0, %v833_v63 }
 0x1fb   : > { %2714 = vtanh.f32 %v3025_v1 }
 0x208   : > { %v2715_v2 = vpop.eup %2714 }
 0x209   : > { %846 = vrot.lane.b32.xlu1 %v2715_v2, %s2749_s7 }
 0x27b   : > { %v847_v3 = vpop.permute.xlu1 %846 }
 0x27c   : > { %v849_v4 = vmul.f32 %v2713_v59, %v847_v3 }
 0x27e   : > { %851 = vrot.lane.b32.xlu0 %v849_v4, %s2750_s8 }
 0x2f0   : > { %v852_v8 = vpop.permute.xlu0 %851 }
 0x2f1   : > { %855 = vst.msk [vmem:[%s2806_s30] sm:$0xf] %vm854_vm3, %v852_v8  ;;  %v856_v9 = vsel %vm272_vm1, %v852_v8, 0  ;;  %v2684_v8 = vld [vmem:[%s2801_s27 + $0x4] sm:$0xf] }
 0x2f2   : > { %v931_v10 = vand.u32 4294901760, %v856_v9 }
 0x2f4   : > { %v932_v15 = vsub.f32 %v856_v9, %v931_v10  ;;  %1048 = vmatmul.mubr.f32.vlgmr.msra.gmra.mxu1 %v931_v10 }
 0x2f5   : > { %1170 = vmatpush1.msra.mxu1 %v2826_v6  ;;  %1215 = vmatprep.mubr.f32.mxu1 %v2748_v11 }
 0x2f6   : > { %v933_v16 = vand.u32 4294901760, %v932_v15  ;;  %1172 = vmatprep.subr.mxu1 %v2828_v7 }
 0x2f7   : > { %1174 = vmatpush1.msra.mxu1 %v2841_v12 }
 0x2f8   : > { %v934_v21 = vsub.f32 %v932_v15, %v933_v16  ;;  %1176 = vmatprep.subr.mxu1 %v2843_v13 }
 0x2f9   : > { %1178 = vmatpush1.msra.mxu1 %v2845_v14 }
 0x2fa   : > { %1180 = vmatprep.subr.mxu1 %v2854_v17  ;;  %v935_v28 = vand.u32 4294901760, %v934_v21 }
 0x2fb   : > { %1182 = vmatpush1.msra.mxu1 %v2859_v19 }
 0x2fc   : > { %1219 = vmatmul.mubr.f32.vlgmr.msra.gmra.mxu1 %v933_v16  ;;  %1346 = vmatprep.subr.mxu1 %v2824_v5 }
 0x2fd   : > { %936 = vmatmul.mubr.f32.vlgmr.msra.gmra.mxu0 %v935_v28  ;;  %1348 = vmatpush1.msra.mxu1 %v2826_v6 }
 0x2fe   : > { %1083 = vmatpush1.msra.mxu0 %v2862_v20  ;;  %1350 = vmatprep.subr.mxu1 %v2828_v7 }
 0x2ff   : > { %1086 = vmatprep.subr.mxu0 %v2866_v22  ;;  %1352 = vmatpush1.msra.mxu1 %v2841_v12 }
 0x300   : > { %1089 = vmatpush1.msra.mxu0 %v2870_v24  ;;  %1354 = vmatprep.subr.mxu1 %v2843_v13 }
 0x301   : > { %1092 = vmatprep.subr.mxu0 %v2873_v25  ;;  %1356 = vmatpush1.msra.mxu1 %v2845_v14 }
 0x302   : > { %1095 = vmatpush1.msra.mxu0 %v2885_v29  ;;  %1358 = vmatprep.subr.mxu1 %v2854_v17 }
 0x303   : > { %1098 = vmatprep.subr.mxu0 %v2898_v33  ;;  %1134 = vmatprep.mubr.f32.mxu0 %v2748_v11 }
 0x304   : > { %1101 = vmatpush1.msra.mxu0 %v2938_v51  ;;  %1360 = vmatpush1.msra.mxu1 %v2859_v19 }
 0x305   : > { %1393 = vmatprep.mubr.f32.mxu1 %v2748_v11  ;;  %1137 = vmatmul.mubr.f32.vlgmr.msra.gmra.mxu0 %v932_v15 }
 0x306   : > { %1252 = vmatprep.subr.mxu0 %v2877_v26  ;;  %1395 = vmatmul.mubr.f32.vlgmr.msra.gmra.mxu1 %v931_v10 }
 0x307   : > { %1256 = vmatpush1.msra.mxu0 %v2880_v27  ;;  %1313 = vmatprep.mubr.f32.mxu0 %v2748_v11 }
 0x308   : > { %1260 = vmatprep.subr.mxu0 %v2889_v30  ;;  %1550 = vmatprep.subr.mxu1 %v2920_v42 }
 0x309   : > { %1264 = vmatpush1.msra.mxu0 %v2892_v31  ;;  %1556 = vmatpush1.msra.mxu1 %v2922_v43 }
 0x30a   : > { %1268 = vmatprep.subr.mxu0 %v2895_v32  ;;  %1562 = vmatprep.subr.mxu1 %v2927_v46 }
 0x30b   : > { %1272 = vmatpush1.msra.mxu0 %v2907_v37  ;;  %1568 = vmatpush1.msra.mxu1 %v2929_v47 }
 0x30c   : > { %1276 = vmatprep.subr.mxu0 %v2917_v41  ;;  %1574 = vmatprep.subr.mxu1 %v2935_v50 }
 0x30d   : > { %1280 = vmatpush1.msra.mxu0 %v2947_v55  ;;  %1580 = vmatpush1.msra.mxu1 %v2941_v52 }
 0x30e   : > { %1315 = vmatmul.mubr.f32.vlgmr.msra.gmra.mxu0 %v931_v10  ;;  %1586 = vmatprep.subr.mxu1 %v2944_v54 }
 0x30f   : > { %1592 = vmatpush1.msra.mxu1 %v2957_v57  ;;  %1462 = vmatprep.subr.mxu0 %v2824_v5 }
 0x310   : > { %1625 = vmatprep.mubr.f32.mxu1 %v2748_v11  ;;  %1747 = vmatprep.subr.mxu1 %v2824_v5 }
 0x311   : > { %1464 = vmatpush1.msra.mxu0 %v2826_v6  ;;  %1509 = vmatprep.mubr.f32.mxu0 %v2748_v11 }
 0x312   : > { %1466 = vmatprep.subr.mxu0 %v2828_v7 }
 0x313   : > { %1468 = vmatpush1.msra.mxu0 %v2841_v12 }
 0x314   : > { %1470 = vmatprep.subr.mxu0 %v2843_v13 }
 0x315   : > { %1472 = vmatpush1.msra.mxu0 %v2845_v14 }
 0x316   : > { %1474 = vmatprep.subr.mxu0 %v2854_v17 }
 0x317   : > { %1476 = vmatpush1.msra.mxu0 %v2859_v19 }
 0x318   : > { %1659 = vmatprep.subr.mxu0 %v2857_v18 }
 0x3b4   : > { %v1049_v35 = vpop.f32.mrf.mxu1 }
 0x3b6   : > { %v1051_v39 = vpop.f32.mrf.mxu1 }
 0x3bc   : > { %v1220_v44 = vpop.f32.mrf.mxu1 }
 0x3bd   : > { %v937_v34 = vpop.f32.mrf.mxu0 }
 0x3be   : > { %v1050_v40 = vadd.f32 %v1049_v35, %v937_v34  ;;  %v1222_v56 = vpop.f32.mrf.mxu1 }
 0x3bf   : > { %v939_v36 = vpop.f32.mrf.mxu0 }
 0x3c0   : > { %v1052_v48 = vadd.f32 %v1051_v39, %v939_v36 }
 0x3c5   : > { %v1138_v38 = vpop.f32.mrf.mxu0 }
 0x3c6   : > { %v1139_v49 = vadd.f32 %v1138_v38, %v1050_v40  ;;  %v1396_v59 = vpop.f32.mrf.mxu1 }
 0x3c7   : > { %v1140_v45 = vpop.f32.mrf.mxu0 }
 0x3c8   : > { %v1141_v53 = vadd.f32 %v1140_v45, %v1052_v48  ;;  %v1221_v58 = vadd.f32 %v1220_v44, %v1139_v49  ;;  %v1398_v2 = vpop.f32.mrf.mxu1 }
 0x3ca   : > { %v1223_v62 = vadd.f32 %v1222_v56, %v1141_v53 }
 0x3ce   : > { %v1316_v60 = vpop.f32.mrf.mxu0 }
 0x3cf   : > { %v1317_v61 = vadd.f32 %v1316_v60, %v1221_v58 }
 0x3d0   : > { %v1318_v63 = vpop.f32.mrf.mxu0 }
 0x3d1   : > { %v1319_v0 = vadd.f32 %v1318_v63, %v1223_v62  ;;  %v1397_v3 = vadd.f32 %v1396_v59, %v1317_v61 }
 0x3d3   : > { %v1399_v4 = vadd.f32 %v1398_v2, %v1319_v0 }
 0x3d5   : > { %v1403_v9 = vsel %vm269_vm2, %v1397_v3, %v1399_v4 }
 0x3d6   : > { %v1404_v10 = vadd.f32 %v2684_v8, %v1403_v9 }
 0x3d8   : > { %2716 = vtanh.f32 %v1404_v10  ;;  %v2685_v16 = vmul.f32 -1.442695, %v1404_v10 }
 0x3da   : > { %2718 = vpow2.f32 %v2685_v16 }
 0x3e5   : > { %v2717_v15 = vpop.eup %2716 }
 0x3e6   : > { %1414 = vrot.lane.b32.xlu1 %v2717_v15, %s2749_s7 }
 0x3e7   : > { %v2719_v21 = vpop.eup %2718 }
 0x3e8   : > { %v1408_v28 = vadd.f32 1.0, %v2719_v21 }
 0x3ea   : > { %2720 = vrcp.f32 %v1408_v28  ;;  %v2687_v28 = vld [vmem:[%s2801_s27 + $0x8] sm:$0xf] }
 0x3f7   : > { %v2721_v34 = vpop.eup %2720 }
 0x3f8   : > { %v1412_v38 = vmul.f32 %v2721_v34, %v3025_v1 }
 0x458   : > { %v1415_v35 = vpop.permute.xlu1 %1414 }
 0x459   : > { %v1417_v36 = vmul.f32 %v2721_v34, %v1415_v35 }
 0x45b   : > { %1419 = vrot.lane.b32.xlu0 %v1417_v36, %s2750_s8 }
 0x4cd   : > { %v1420_v39 = vpop.permute.xlu0 %1419 }
 0x4ce   : > { %v3093_v40 = vadd.f32 %v1420_v39, %v1412_v38 }
 0x4d0   : > { %2722 = vtanh.f32 %v3093_v40 }
 0x4dd   : > { %v2723_v44 = vpop.eup %2722 }
 0x4de   : > { %1425 = vrot.lane.b32.xlu1 %v2723_v44, %s2749_s7 }
 0x550   : > { %v1426_v45 = vpop.permute.xlu1 %1425 }
 0x551   : > { %v1428_v48 = vmul.f32 %v2721_v34, %v1426_v45 }
 0x553   : > { %1430 = vrot.lane.b32.xlu0 %v1428_v48, %s2750_s8 }
 0x5c5   : > { %v1431_v49 = vpop.permute.xlu0 %1430 }
 0x5c6   : > { %2686 = vst.msk [vmem:[%s2806_s30 + $0x4] sm:$0xf] %vm854_vm3, %v1431_v49  ;;  %v1435_v53 = vsel %vm272_vm1, %v1431_v49, 0 }
 0x5c7   : > { %v1510_v56 = vand.u32 4294901760, %v1435_v53 }
 0x5c9   : > { %v1511_v58 = vsub.f32 %v1435_v53, %v1510_v56  ;;  %1627 = vmatmul.mubr.f32.vlgmr.msra.gmra.mxu1 %v1510_v56 }
 0x5ca   : > { %1749 = vmatpush1.msra.mxu1 %v2826_v6  ;;  %1794 = vmatprep.mubr.f32.mxu1 %v2748_v11 }
 0x5cb   : > { %v1512_v1 = vand.u32 4294901760, %v1511_v58  ;;  %1751 = vmatprep.subr.mxu1 %v2828_v7 }
 0x5cc   : > { %1753 = vmatpush1.msra.mxu1 %v2841_v12 }
 0x5cd   : > { %v1513_v59 = vsub.f32 %v1511_v58, %v1512_v1  ;;  %1755 = vmatprep.subr.mxu1 %v2843_v13 }
 0x5ce   : > { %1757 = vmatpush1.msra.mxu1 %v2845_v14 }
 0x5cf   : > { %1759 = vmatprep.subr.mxu1 %v2854_v17  ;;  %v1514_v60 = vand.u32 4294901760, %v1513_v59 }
 0x5d0   : > { %1761 = vmatpush1.msra.mxu1 %v2859_v19 }
 0x5d1   : > { %1798 = vmatmul.mubr.f32.vlgmr.msra.gmra.mxu1 %v1512_v1  ;;  %1925 = vmatprep.subr.mxu1 %v2824_v5 }
 0x5d2   : > { %1515 = vmatmul.mubr.f32.vlgmr.msra.gmra.mxu0 %v1514_v60  ;;  %1927 = vmatpush1.msra.mxu1 %v2826_v6 }
 0x5d3   : > { %1662 = vmatpush1.msra.mxu0 %v2862_v20  ;;  %1929 = vmatprep.subr.mxu1 %v2828_v7 }
 0x5d4   : > { %1665 = vmatprep.subr.mxu0 %v2866_v22  ;;  %1931 = vmatpush1.msra.mxu1 %v2841_v12 }
 0x5d5   : > { %1668 = vmatpush1.msra.mxu0 %v2870_v24  ;;  %1933 = vmatprep.subr.mxu1 %v2843_v13 }
 0x5d6   : > { %1671 = vmatprep.subr.mxu0 %v2873_v25  ;;  %1935 = vmatpush1.msra.mxu1 %v2845_v14 }
 0x5d7   : > { %1674 = vmatpush1.msra.mxu0 %v2885_v29  ;;  %1937 = vmatprep.subr.mxu1 %v2854_v17 }
 0x5d8   : > { %1677 = vmatprep.subr.mxu0 %v2898_v33  ;;  %1713 = vmatprep.mubr.f32.mxu0 %v2748_v11 }
 0x5d9   : > { %1680 = vmatpush1.msra.mxu0 %v2938_v51  ;;  %1939 = vmatpush1.msra.mxu1 %v2859_v19 }
 0x5da   : > { %1972 = vmatprep.mubr.f32.mxu1 %v2748_v11  ;;  %1716 = vmatmul.mubr.f32.vlgmr.msra.gmra.mxu0 %v1511_v58 }
 0x5db   : > { %1831 = vmatprep.subr.mxu0 %v2877_v26  ;;  %1974 = vmatmul.mubr.f32.vlgmr.msra.gmra.mxu1 %v1510_v56 }
 0x5dc   : > { %1835 = vmatpush1.msra.mxu0 %v2880_v27  ;;  %1892 = vmatprep.mubr.f32.mxu0 %v2748_v11 }
 0x5dd   : > { %1839 = vmatprep.subr.mxu0 %v2889_v30  ;;  %2129 = vmatprep.subr.mxu1 %v2920_v42 }
 0x5de   : > { %1843 = vmatpush1.msra.mxu0 %v2892_v31  ;;  %2135 = vmatpush1.msra.mxu1 %v2922_v43 }
 0x5df   : > { %1847 = vmatprep.subr.mxu0 %v2895_v32  ;;  %2141 = vmatprep.subr.mxu1 %v2927_v46 }
 0x5e0   : > { %1851 = vmatpush1.msra.mxu0 %v2907_v37  ;;  %2147 = vmatpush1.msra.mxu1 %v2929_v47 }
 0x5e1   : > { %1855 = vmatprep.subr.mxu0 %v2917_v41  ;;  %2153 = vmatprep.subr.mxu1 %v2935_v50 }
 0x5e2   : > { %1859 = vmatpush1.msra.mxu0 %v2947_v55  ;;  %2159 = vmatpush1.msra.mxu1 %v2941_v52 }
 0x5e3   : > { %1894 = vmatmul.mubr.f32.vlgmr.msra.gmra.mxu0 %v1510_v56  ;;  %2165 = vmatprep.subr.mxu1 %v2944_v54 }
 0x5e4   : > { %2171 = vmatpush1.msra.mxu1 %v2957_v57  ;;  %2041 = vmatprep.subr.mxu0 %v2824_v5 }
 0x5e5   : > { %2204 = vmatprep.mubr.f32.mxu1 %v2748_v11  ;;  %2326 = vmatprep.subr.mxu1 %v2824_v5 }
 0x5e6   : > { %2043 = vmatpush1.msra.mxu0 %v2826_v6  ;;  %2088 = vmatprep.mubr.f32.mxu0 %v2748_v11 }
 0x5e7   : > { %2045 = vmatprep.subr.mxu0 %v2828_v7 }
 0x5e8   : > { %2047 = vmatpush1.msra.mxu0 %v2841_v12 }
 0x5e9   : > { %2049 = vmatprep.subr.mxu0 %v2843_v13 }
 0x5ea   : > { %2051 = vmatpush1.msra.mxu0 %v2845_v14 }
 0x5eb   : > { %2053 = vmatprep.subr.mxu0 %v2854_v17 }
 0x5ec   : > { %2055 = vmatpush1.msra.mxu0 %v2859_v19 }
 0x5ed   : > { %2238 = vmatprep.subr.mxu0 %v2857_v18 }
 0x689   : > { %v1628_v43 = vpop.f32.mrf.mxu1 }
 0x68b   : > { %v1630_v50 = vpop.f32.mrf.mxu1 }
 0x691   : > { %v1799_v54 = vpop.f32.mrf.mxu1 }
 0x692   : > { %v1516_v42 = vpop.f32.mrf.mxu0 }
 0x693   : > { %v1629_v52 = vadd.f32 %v1628_v43, %v1516_v42  ;;  %v1801_v0 = vpop.f32.mrf.mxu1 }
 0x694   : > { %v1518_v46 = vpop.f32.mrf.mxu0 }
 0x695   : > { %v1631_v61 = vadd.f32 %v1630_v50, %v1518_v46 }
 0x69a   : > { %v1717_v47 = vpop.f32.mrf.mxu0 }
 0x69b   : > { %v1718_v62 = vadd.f32 %v1717_v47, %v1629_v52  ;;  %v1975_v3 = vpop.f32.mrf.mxu1 }
 0x69c   : > { %v1719_v57 = vpop.f32.mrf.mxu0 }
 0x69d   : > { %v1720_v63 = vadd.f32 %v1719_v57, %v1631_v61  ;;  %v1800_v2 = vadd.f32 %v1799_v54, %v1718_v62  ;;  %v1977_v15 = vpop.f32.mrf.mxu1 }
 0x69f   : > { %v1802_v9 = vadd.f32 %v1801_v0, %v1720_v63 }
 0x6a3   : > { %v1895_v4 = vpop.f32.mrf.mxu0 }
 0x6a4   : > { %v1896_v8 = vadd.f32 %v1895_v4, %v1800_v2 }
 0x6a5   : > { %v1897_v10 = vpop.f32.mrf.mxu0 }
 0x6a6   : > { %v1898_v18 = vadd.f32 %v1897_v10, %v1802_v9  ;;  %v1976_v16 = vadd.f32 %v1975_v3, %v1896_v8 }
 0x6a8   : > { %v1978_v21 = vadd.f32 %v1977_v15, %v1898_v18 }
 0x6aa   : > { %v1982_v34 = vsel %vm269_vm2, %v1976_v16, %v1978_v21 }
 0x6ab   : > { %v1983_v35 = vadd.f32 %v2687_v28, %v1982_v34 }
 0x6ad   : > { %2724 = vtanh.f32 %v1983_v35  ;;  %v2688_v38 = vmul.f32 -1.442695, %v1983_v35 }
 0x6af   : > { %2726 = vpow2.f32 %v2688_v38 }
 0x6ba   : > { %v2725_v36 = vpop.eup %2724 }
 0x6bb   : > { %1993 = vrot.lane.b32.xlu1 %v2725_v36, %s2749_s7 }
 0x6bc   : > { %v2727_v39 = vpop.eup %2726 }
 0x6bd   : > { %v1987_v44 = vadd.f32 1.0, %v2727_v39 }
 0x6bf   : > { %2728 = vrcp.f32 %v1987_v44 }
 0x6cc   : > { %v2729_v45 = vpop.eup %2728 }
 0x6cd   : > { %v1991_v53 = vmul.f32 %v2729_v45, %v3093_v40 }
 0x72d   : > { %v1994_v48 = vpop.permute.xlu1 %1993 }
 0x72e   : > { %v1996_v49 = vmul.f32 %v2729_v45, %v1994_v48 }
 0x730   : > { %1998 = vrot.lane.b32.xlu0 %v1996_v49, %s2750_s8 }
 0x7a2   : > { %v1999_v56 = vpop.permute.xlu0 %1998 }
 0x7a3   : > { %v3161_v58 = vadd.f32 %v1999_v56, %v1991_v53 }
 0x7a5   : > { %2730 = vtanh.f32 %v3161_v58 }
 0x7b2   : > { %v2731_v1 = vpop.eup %2730 }
 0x7b3   : > { %2004 = vrot.lane.b32.xlu1 %v2731_v1, %s2749_s7 }
 0x825   : > { %v2005_v59 = vpop.permute.xlu1 %2004 }
 0x826   : > { %v2007_v60 = vmul.f32 %v2729_v45, %v2005_v59 }
 0x828   : > { %2009 = vrot.lane.b32.xlu0 %v2007_v60, %s2750_s8 }
 0x89a   : > { %v2010_v42 = vpop.permute.xlu0 %2009 }
 0x89b   : > { %2689 = vst.msk [vmem:[%s2806_s30 + $0x8] sm:$0xf] %vm854_vm3, %v2010_v42  ;;  %v2014_v43 = vsel %vm272_vm1, %v2010_v42, 0 }
 0x89c   : > { %v2089_v46 = vand.u32 4294901760, %v2014_v43 }
 0x89e   : > { %v2090_v47 = vsub.f32 %v2014_v43, %v2089_v46  ;;  %2206 = vmatmul.mubr.f32.vlgmr.msra.gmra.mxu1 %v2089_v46 }
 0x89f   : > { %2328 = vmatpush1.msra.mxu1 %v2826_v6  ;;  %2373 = vmatprep.mubr.f32.mxu1 %v2748_v11 }
 0x8a0   : > { %v2091_v40 = vand.u32 4294901760, %v2090_v47  ;;  %2330 = vmatprep.subr.mxu1 %v2828_v7 }
 0x8a1   : > { %2332 = vmatpush1.msra.mxu1 %v2841_v12 }
 0x8a2   : > { %v2092_v50 = vsub.f32 %v2090_v47, %v2091_v40  ;;  %2334 = vmatprep.subr.mxu1 %v2843_v13 }
 0x8a3   : > { %2336 = vmatpush1.msra.mxu1 %v2845_v14 }
 0x8a4   : > { %2338 = vmatprep.subr.mxu1 %v2854_v17  ;;  %v2093_v52 = vand.u32 4294901760, %v2092_v50 }
 0x8a5   : > { %2340 = vmatpush1.msra.mxu1 %v2859_v19 }
 0x8a6   : > { %2377 = vmatmul.mubr.f32.vlgmr.msra.gmra.mxu1 %v2091_v40  ;;  %2504 = vmatprep.subr.mxu1 %v2824_v5 }
 0x8a7   : > { %2094 = vmatmul.mubr.f32.vlgmr.msra.gmra.mxu0 %v2093_v52  ;;  %2506 = vmatpush1.msra.mxu1 %v2826_v6 }
 0x8a8   : > { %2241 = vmatpush1.msra.mxu0 %v2862_v20  ;;  %2508 = vmatprep.subr.mxu1 %v2828_v7 }
 0x8a9   : > { %2244 = vmatprep.subr.mxu0 %v2866_v22  ;;  %2510 = vmatpush1.msra.mxu1 %v2841_v12 }
 0x8aa   : > { %2247 = vmatpush1.msra.mxu0 %v2870_v24  ;;  %2512 = vmatprep.subr.mxu1 %v2843_v13 }
 0x8ab   : > { %2250 = vmatprep.subr.mxu0 %v2873_v25  ;;  %2514 = vmatpush1.msra.mxu1 %v2845_v14 }
 0x8ac   : > { %2253 = vmatpush1.msra.mxu0 %v2885_v29  ;;  %2516 = vmatprep.subr.mxu1 %v2854_v17 }
 0x8ad   : > { %2256 = vmatprep.subr.mxu0 %v2898_v33  ;;  %2292 = vmatprep.mubr.f32.mxu0 %v2748_v11 }
 0x8ae   : > { %2259 = vmatpush1.msra.mxu0 %v2938_v51  ;;  %2518 = vmatpush1.msra.mxu1 %v2859_v19  ;;  %v2690_v51 = vld [vmem:[%s2801_s27 + $0xc] sm:$0xf]  ;;  %s2751_s27 = smov 96  }
 0x8af   : > { %2551 = vmatprep.mubr.f32.mxu1 %v2748_v11  ;;  %2295 = vmatmul.mubr.f32.vlgmr.msra.gmra.mxu0 %v2090_v47 }
 0x8b0   : > { %2410 = vmatprep.subr.mxu0 %v2877_v26  ;;  %2553 = vmatmul.mubr.f32.vlgmr.msra.gmra.mxu1 %v2089_v46 }
 0x8b1   : > { %2414 = vmatpush1.msra.mxu0 %v2880_v27  ;;  %2471 = vmatprep.mubr.f32.mxu0 %v2748_v11 }
 0x8b2   : > { %2418 = vmatprep.subr.mxu0 %v2889_v30 }
 0x8b3   : > { %2422 = vmatpush1.msra.mxu0 %v2892_v31 }
 0x8b4   : > { %2426 = vmatprep.subr.mxu0 %v2895_v32 }
 0x8b5   : > { %2430 = vmatpush1.msra.mxu0 %v2907_v37 }
 0x8b6   : > { %2434 = vmatprep.subr.mxu0 %v2917_v41 }
 0x8b7   : > { %2438 = vmatpush1.msra.mxu0 %v2947_v55 }
 0x8b8   : > { %2473 = vmatmul.mubr.f32.vlgmr.msra.gmra.mxu0 %v2089_v46 }
 0x95e   : > { %v2207_v6 = vpop.f32.mrf.mxu1 }
 0x960   : > { %v2209_v13 = vpop.f32.mrf.mxu1 }
 0x966   : > { %v2378_v11 = vpop.f32.mrf.mxu1 }
 0x967   : > { %v2095_v5 = vpop.f32.mrf.mxu0 }
 0x968   : > { %v2208_v14 = vadd.f32 %v2207_v6, %v2095_v5  ;;  %v2380_v24 = vpop.f32.mrf.mxu1 }
 0x969   : > { %v2097_v7 = vpop.f32.mrf.mxu0 }
 0x96a   : > { %v2210_v19 = vadd.f32 %v2209_v13, %v2097_v7 }
 0x96f   : > { %v2296_v12 = vpop.f32.mrf.mxu0 }
 0x970   : > { %v2297_v20 = vadd.f32 %v2296_v12, %v2208_v14  ;;  %v2554_v26 = vpop.f32.mrf.mxu1 }
 0x971   : > { %v2298_v17 = vpop.f32.mrf.mxu0 }
 0x972   : > { %v2299_v22 = vadd.f32 %v2298_v17, %v2210_v19  ;;  %v2379_v25 = vadd.f32 %v2378_v11, %v2297_v20  ;;  %v2556_v33 = vpop.f32.mrf.mxu1 }
 0x974   : > { %v2381_v30 = vadd.f32 %v2380_v24, %v2299_v22 }
 0x978   : > { %v2474_v27 = vpop.f32.mrf.mxu0 }
 0x979   : > { %v2475_v29 = vadd.f32 %v2474_v27, %v2379_v25 }
 0x97a   : > { %v2476_v31 = vpop.f32.mrf.mxu0 }
 0x97b   : > { %v2477_v32 = vadd.f32 %v2476_v31, %v2381_v30  ;;  %v2555_v37 = vadd.f32 %v2554_v26, %v2475_v29 }
 0x97d   : > { %v2557_v41 = vadd.f32 %v2556_v33, %v2477_v32 }
 0x97f   : > { %v2561_v55 = vsel %vm269_vm2, %v2555_v37, %v2557_v41 }
 0x980   : > { %v2562_v54 = vadd.f32 %v2690_v51, %v2561_v55 }
 0x982   : > { %2732 = vtanh.f32 %v2562_v54  ;;  %v2691_v61 = vmul.f32 -1.442695, %v2562_v54 }
 0x984   : > { %2734 = vpow2.f32 %v2691_v61 }
 0x98f   : > { %v2733_v57 = vpop.eup %2732 }
 0x990   : > { %2572 = vrot.lane.b32.xlu1 %v2733_v57, %s2749_s7 }
 0x991   : > { %v2735_v62 = vpop.eup %2734 }
 0x992   : > { %v2566_v63 = vadd.f32 1.0, %v2735_v62 }
 0x994   : > { %2736 = vrcp.f32 %v2566_v63 }
 0x9a1   : > { %v2737_v0 = vpop.eup %2736 }
 0x9a2   : > { %v2570_v4 = vmul.f32 %v2737_v0, %v3161_v58 }
 0xa02   : > { %v2573_v2 = vpop.permute.xlu1 %2572 }
 0xa03   : > { %v2575_v3 = vmul.f32 %v2737_v0, %v2573_v2 }
 0xa05   : > { %2577 = vrot.lane.b32.xlu0 %v2575_v3, %s2750_s8 }
 0xa77   : > { %v2578_v23 = vpop.permute.xlu0 %2577 }
 0xa78   : > { %v2580_v8 = vadd.f32 %v2578_v23, %v2570_v4 }
 0xa7a   : > { %2738 = vtanh.f32 %v2580_v8 }
 0xa87   : > { %v2739_v9 = vpop.eup %2738 }
 0xa88   : > { %2583 = vrot.lane.b32.xlu1 %v2739_v9, %s2749_s7 }
 0xa8c   : > { %2595 = vrot.lane.b32.xlu1 %v2580_v8, %s2751_s27 }
 0xafa   : > { %v2584_v10 = vpop.permute.xlu1 %2583 }
 0xafb   : > { %v2586_v18 = vmul.f32 %v2737_v0, %v2584_v10 }
 0xafd   : > { %2588 = vrot.lane.b32.xlu0 %v2586_v18, %s2750_s8 }
 0xafe   : > { %v2596_v15 = vpop.permute.xlu1 %2595 }
 0xaff   : > { %2598 = vst.msk [vmem:[#allocation3] sm:$0xf] %vm854_vm3, %v2596_v15 }
 0xb6c   : > { %2602 = sbr.rel (%p2693_p5) target bundleno = 2930 (0xb72), region = 44 }
 0xb6f   : > { %v2589_v16 = vpop.permute.xlu0 %2588 }
 0xb70   : > { %2692 = vst.msk [vmem:[%s2806_s30 + $0xc] sm:$0xf] %vm854_vm3, %v2589_v16  ;;  %2593 = vst.msk [vmem:[#allocation2] sm:$0xf] %vm854_vm3, %v2589_v16 }
 0xb71   : > { %2603 = vst.msk [vmem:[%s3232_s5] sm:$0xf] %vm854_vm3, %v2589_v16  ;;  %2604 = vst.msk [vmem:[%s3233_s6] sm:$0xf] %vm854_vm3, %v2596_v15 }
 0xb72 PF: > { %s17_s21 = sadd.s32 1, %s2746_s21  }
 0xb73   : > { %p14_p6 = scmp.ge.s32.totalorder %s17_s21, 4  }
 0xb75   :  { %16 = sbr.rel (!%p14_p6) target bundleno = 1 (0x1), region = 96 }

</bundles_post_ra>
